<compile_context>
chip_gen: v6e
topology: v6e:2x2x1
jax: 0.10.0
libtpu: 0.0.40
codegen_flags: <defaults>
</compile_context>

<pallas_src>
import functools
import math

import jax
import jax.numpy as jnp
from jax.experimental import pallas as pl
from jax.experimental.pallas import tpu as pltpu


_SUBLANE = {4: 8, 2: 16, 1: 32}  # itemsize -> sublane packing (f32 / bf16 / int8)


def _diff_weight_kernel(*refs, structured, concrete_lower, concrete_upper):
    if structured:
        x_ref, ft_ref, alpha_ref, zg_ref, out_ref = refs
    else:
        x_ref, ft_ref, alpha_ref, out_ref = refs

    span = concrete_upper - concrete_lower

    # concrete_stretched(alpha), deterministic: clip(sigmoid(a)*(r-l)+l, 0, 1)
    # Always compute in f32 (v5e VPU/EUP has no bf16 path; deterministic
    # rounding for mixed-precision weights).
    alpha = alpha_ref[...].astype(jnp.float32)
    z = jnp.clip(jax.nn.sigmoid(alpha) * span + concrete_lower, 0.0, 1.0)

    if structured:
        # Group gate pre-folded to one f32 scalar in the wrapper, read from SMEM.
        z = z * zg_ref[0, 0]

    x = x_ref[...].astype(jnp.float32)
    ft = ft_ref[...].astype(jnp.float32)
    # finetune - (finetune - X).detach() + z * (finetune - X)  ==  X + z*(finetune - X)
    out_ref[...] = (x + z * (ft - x)).astype(out_ref.dtype)


def _canonical_2d(shape, itemsize, sub, target_bytes, lane_cap=16384):
    """Pick a 2-D view (R, W) of the weight that is as lane-dense as possible.

    The op is elementwise, so any exact reshape is semantically free.  If the
    natural 2-D view already has a 128-aligned last dim we keep it; otherwise
    we re-fold the flat element stream into (R, W) with W a multiple of 128
    (preferring sublane-aligned R), which turns masked partial stores into
    full-width unmasked stores.
    """
    total = math.prod(shape)
    if len(shape) == 1:
        nat = (1, shape[0])
    elif len(shape) == 2:
        nat = (shape[0], shape[1])
    else:
        nat = (shape[0], total // shape[0])

    if nat[1] % 128 == 0:
        return nat

    if total % 128 == 0:
        t = total // 128
        best = None      # lane-dense AND sublane-aligned rows
        widest = None    # lane-dense only
        d = 1
        while d * d <= t:
            if t % d == 0:
                for dd in (d, t // d):
                    w = 128 * dd
                    if w > lane_cap:
                        continue
                    r = total // w
                    if widest is None or w > widest[1]:
                        widest = (r, w)
                    if r % sub == 0 and (best is None or w > best[1]):
                        best = (r, w)
            d += 1
        if best is not None:
            return best
        if widest is not None:
            return widest

    # Small, non-128-divisible tensors: one flat row -> at most one partial
    # vreg tail instead of a masked tail on every row.
    if total * itemsize <= target_bytes:
        return (1, total)
    return nat


def _choose_tiles(M, N, itemsize, sub, target_bytes):
    """Pick (tm, tn) so each block is ~target_bytes and layout-legal.

    Blocks only need (sub, 128) alignment (or full extent); they do NOT need
    to divide the array — Pallas masks trailing partial blocks.
    """
    # Column tile: keep the full (lane-aligned) row unless even a
    # minimum-height block would blow the budget.
    if N % 128 == 0:
        tn_cap = max(128, (target_bytes // (sub * itemsize)) // 128 * 128)
        tn = min(N, tn_cap)
    else:
        tn = N  # full-extent last dim (always a legal block shape)

    # Row tile: largest multiple of the sublane packing under budget.
    rows_cap = max(sub, (target_bytes // (tn * itemsize)) // sub * sub)
    tm = M if M <= rows_cap else rows_cap

    # Prefer >= 2 grid steps so v7x's two TensorCores both get work, but only
    # when the tensor is big enough to amortize the ~0.35us per-step overhead.
    if tm == M and tn == N and M * N * itemsize >= (512 << 10):
        if M >= 2 * sub:
            tm = ((M + 1) // 2 + sub - 1) // sub * sub
        elif N % 128 == 0 and N >= 256:
            tn = ((N + 1) // 2 + 127) // 128 * 128
    return tm, tn


def diff_weight_forward(x, finetune, alpha, alpha_group=None, *,
                        concrete_lower=-1.5, concrete_upper=1.5,
                        structured=True, block_bytes_target=2 << 20,
                        donate_x=False):
    """Pallas-TPU forward of DiffWeight (deterministic / eval mode).

    Accepts weight tensors of any rank; the op is purely elementwise so the
    weight is viewed as a lane-dense 2-D slab internally (free reshape).
    """
    assert x.shape == finetune.shape == alpha.shape
    orig_shape = x.shape

    itemsizes = [jnp.dtype(a.dtype).itemsize for a in (x, finetune, alpha)]
    sub = max(_SUBLANE.get(i, 8) for i in itemsizes)   # strictest sublane req.
    max_item = max(itemsizes)

    M, N = _canonical_2d(orig_shape, max_item, sub, block_bytes_target)
    x2, ft2, al2 = (a.reshape(M, N) for a in (x, finetune, alpha))

    tm, tn = _choose_tiles(M, N, max_item, sub, block_bytes_target)
    grid = (pl.cdiv(M, tm), pl.cdiv(N, tn))

    tile_spec = pl.BlockSpec((tm, tn), lambda i, j: (i, j))
    in_specs = [tile_spec, tile_spec, tile_spec]
    args = [x2, ft2, al2]

    if structured:
        assert alpha_group is not None
        span = float(concrete_upper) - float(concrete_lower)
        ag = jnp.asarray(alpha_group, dtype=jnp.float32).reshape(-1)[0]
        zg = jnp.clip(jax.nn.sigmoid(ag) * span + float(concrete_lower), 0.0, 1.0)
        zg = zg.reshape(1, 1).astype(jnp.float32)
        # Single f32 scalar lives in SMEM; no per-step padded VMEM tile DMA.
        in_specs.append(pl.BlockSpec(memory_space=pltpu.MemorySpace.SMEM))
        args.append(zg)

    kernel = functools.partial(
        _diff_weight_kernel,
        structured=structured,
        concrete_lower=float(concrete_lower),
        concrete_upper=float(concrete_upper),
    )

    # 4 tiles (3 in + 1 out) x double buffering + headroom; cap well under
    # v7x's 64 MiB physical VMEM per TensorCore.
    block_bytes = tm * tn * max_item
    vmem_limit = int(min(48 << 20, max(16 << 20, 10 * block_bytes)))

    call_kwargs = {}
    if donate_x:
        # Caller may donate X's buffer for the output (same shape/dtype).
        call_kwargs["input_output_aliases"] = {0: 0}

    out2 = pl.pallas_call(
        kernel,
        out_shape=jax.ShapeDtypeStruct((M, N), x2.dtype),
        grid_spec=pltpu.PrefetchScalarGridSpec(
            num_scalar_prefetch=0,
            grid=grid,
            in_specs=in_specs,
            out_specs=tile_spec,
        ),
        compiler_params=pltpu.CompilerParams(
            dimension_semantics=("parallel", "parallel"),
            vmem_limit_bytes=vmem_limit),
        **call_kwargs,
    )(*args)
    return out2.reshape(orig_shape)


def diff_weight_reference(x, finetune, alpha, alpha_group=None, *,
                          concrete_lower=-1.5, concrete_upper=1.5,
                          structured=True):
    l, r = float(concrete_lower), float(concrete_upper)
    xf = x.astype(jnp.float32)
    ftf = finetune.astype(jnp.float32)
    z = jnp.clip(jax.nn.sigmoid(alpha.astype(jnp.float32)) * (r - l) + l, 0.0, 1.0)
    if structured:
        ag = jnp.asarray(alpha_group, dtype=jnp.float32).reshape(-1)[0]
        zg = jnp.clip(jax.nn.sigmoid(ag) * (r - l) + l, 0.0, 1.0)
        z = z * zg
    return (xf + z * (ftf - xf)).astype(x.dtype)


if __name__ == "__main__":
    concrete_lower, concrete_upper = -1.5, 1.5
    key = jax.random.PRNGKey(0)

    # ------ case 1: Linear-style f32 weight (out=32, in=128), structured ------
    k1, k2, k3, key = jax.random.split(key, 4)
    M, N = 32, 128
    x = jax.random.normal(k1, (M, N), dtype=jnp.float32)
    finetune = x + 0.1 * jax.random.normal(k2, (M, N), dtype=jnp.float32)
    alpha = 2.0 * jax.random.normal(k3, (M, N), dtype=jnp.float32)  # non-trivial gates
    alpha_group = jnp.zeros((1,), dtype=jnp.float32) + 0.3

    out = diff_weight_forward(x, finetune, alpha, alpha_group,
                              concrete_lower=concrete_lower,
                              concrete_upper=concrete_upper, structured=True)
    out = jax.block_until_ready(out)
    ref = diff_weight_reference(x, finetune, alpha, alpha_group,
                                concrete_lower=concrete_lower,
                                concrete_upper=concrete_upper, structured=True)
    assert out.shape == (M, N) and out.dtype == jnp.float32
    assert jnp.allclose(out, ref, atol=1e-5, rtol=1e-4), "f32 structured mismatch"

    # ------ case 2: bf16 weight (64, 256), structured (sublane-16 tiling) ------
    k1, k2, k3, key = jax.random.split(key, 4)
    M2, N2 = 64, 256
    xb = jax.random.normal(k1, (M2, N2), dtype=jnp.float32).astype(jnp.bfloat16)
    ftb = (xb.astype(jnp.float32)
           + 0.1 * jax.random.normal(k2, (M2, N2), dtype=jnp.float32)).astype(jnp.bfloat16)
    alb = (2.0 * jax.random.normal(k3, (M2, N2), dtype=jnp.float32)).astype(jnp.bfloat16)
    agb = jnp.zeros((1,), dtype=jnp.float32) - 0.5

    outb = diff_weight_forward(xb, ftb, alb, agb,
                               concrete_lower=concrete_lower,
                               concrete_upper=concrete_upper, structured=True)
    outb = jax.block_until_ready(outb)
    refb = diff_weight_reference(xb, ftb, alb, agb,
                                 concrete_lower=concrete_lower,
                                 concrete_upper=concrete_upper, structured=True)
    assert outb.dtype == jnp.bfloat16
    assert jnp.allclose(outb.astype(jnp.float32), refb.astype(jnp.float32),
                        atol=2e-2, rtol=2e-2), "bf16 structured mismatch"

    # ------ case 3: conv2d-style 4-D f32 weight (4, 2, 4, 16), unstructured ------
    k1, k2, k3, key = jax.random.split(key, 4)
    cshape = (4, 2, 4, 16)
    xc = jax.random.normal(k1, cshape, dtype=jnp.float32)
    ftc = xc + 0.1 * jax.random.normal(k2, cshape, dtype=jnp.float32)
    alc = 2.0 * jax.random.normal(k3, cshape, dtype=jnp.float32)

    outc = diff_weight_forward(xc, ftc, alc, None,
                               concrete_lower=concrete_lower,
                               concrete_upper=concrete_upper, structured=False)
    outc = jax.block_until_ready(outc)
    refc = diff_weight_reference(xc, ftc, alc, None,
                                 concrete_lower=concrete_lower,
                                 concrete_upper=concrete_upper, structured=False)
    assert outc.shape == cshape
    assert jnp.allclose(outc, refc, atol=1e-5, rtol=1e-4), "conv2d unstructured mismatch"

    # ------ case 4: conv1d-style f32 weight (32, 16, 9), structured ------------
    # (last dim 9 -> exercises the lane-dense re-fold path, no masked stores)
    k1, k2, k3, key = jax.random.split(key, 4)
    dshape = (32, 16, 9)
    xd = jax.random.normal(k1, dshape, dtype=jnp.float32)
    ftd = xd + 0.1 * jax.random.normal(k2, dshape, dtype=jnp.float32)
    ald = 2.0 * jax.random.normal(k3, dshape, dtype=jnp.float32)
    agd = jnp.zeros((1,), dtype=jnp.float32) + 1.0

    outd = diff_weight_forward(xd, ftd, ald, agd,
                               concrete_lower=concrete_lower,
                               concrete_upper=concrete_upper, structured=True)
    outd = jax.block_until_ready(outd)
    refd = diff_weight_reference(xd, ftd, ald, agd,
                                 concrete_lower=concrete_lower,
                                 concrete_upper=concrete_upper, structured=True)
    assert outd.shape == dshape
    assert jnp.allclose(outd, refd, atol=1e-5, rtol=1e-4), "conv1d structured mismatch"

    # TODO(synk): stochastic (training-mode) concrete_stretched sampling (uniform
    # noise + log-sigmoid reparametrization) is not implemented; deterministic
    # (eval / not-training) path only, matching the module's eval branch.
    print("KERNEL_OK")
</pallas_src>

<mosaic_0001>
module attributes {stable_mosaic.version = 11 : i64} {
  func.func @_diff_weight_kernel(%arg0: i32, %arg1: i32, %arg2: memref<32x128xf32, #tpu.memory_space<vmem>>, %arg3: memref<32x128xf32, #tpu.memory_space<vmem>>, %arg4: memref<32x128xf32, #tpu.memory_space<vmem>>, %arg5: memref<1x1xf32, #tpu.memory_space<smem>>, %arg6: memref<32x128xf32, #tpu.memory_space<vmem>>) attributes {dimension_semantics = [#tpu.dimension_semantics<parallel>, #tpu.dimension_semantics<parallel>], iteration_bounds = array<i64: 1, 1>, scalar_prefetch = 0 : i64, scratch_operands = 0 : i64, tpu.core_type = #tpu.core_type<tc>, window_params = [{transform_indices = @transform_0, window_bounds = array<i64: 32, 128>}, {transform_indices = @transform_1, window_bounds = array<i64: 32, 128>}, {transform_indices = @transform_2, window_bounds = array<i64: 32, 128>}, {transform_indices = @transform_3, window_bounds = array<i64: 1, 1>}, {transform_indices = @transform_4, window_bounds = array<i64: 32, 128>}]} {
    %c0 = arith.constant 0 : index
    %c0_0 = arith.constant 0 : index
    %0 = vector.load %arg4[%c0, %c0_0] : memref<32x128xf32, #tpu.memory_space<vmem>>, vector<32x128xf32>
    %1 = arith.negf %0 : vector<32x128xf32>
    %2 = math.exp %1 : vector<32x128xf32>
    %cst = arith.constant 1.000000e+00 : f32
    %3 = vector.broadcast %cst : f32 to vector<32x128xf32>
    %4 = arith.addf %3, %2 : vector<32x128xf32>
    %5 = arith.divf %3, %4 : vector<32x128xf32>
    %cst_1 = arith.constant 3.000000e+00 : f32
    %6 = vector.broadcast %cst_1 : f32 to vector<32x128xf32>
    %7 = arith.mulf %5, %6 : vector<32x128xf32>
    %cst_2 = arith.constant -1.500000e+00 : f32
    %8 = vector.broadcast %cst_2 : f32 to vector<32x128xf32>
    %9 = arith.addf %7, %8 : vector<32x128xf32>
    %cst_3 = arith.constant 0.000000e+00 : f32
    %cst_4 = arith.constant 1.000000e+00 : f32
    %10 = vector.broadcast %cst_3 : f32 to vector<32x128xf32>
    %11 = arith.maximumf %10, %9 : vector<32x128xf32>
    %12 = vector.broadcast %cst_4 : f32 to vector<32x128xf32>
    %13 = arith.minimumf %12, %11 : vector<32x128xf32>
    %c0_5 = arith.constant 0 : index
    %c0_6 = arith.constant 0 : index
    %14 = memref.load %arg5[%c0_5, %c0_6] : memref<1x1xf32, #tpu.memory_space<smem>>
    %15 = vector.broadcast %14 : f32 to vector<32x128xf32>
    %16 = arith.mulf %13, %15 : vector<32x128xf32>
    %c0_7 = arith.constant 0 : index
    %c0_8 = arith.constant 0 : index
    %17 = vector.load %arg2[%c0_7, %c0_8] : memref<32x128xf32, #tpu.memory_space<vmem>>, vector<32x128xf32>
    %c0_9 = arith.constant 0 : index
    %c0_10 = arith.constant 0 : index
    %18 = vector.load %arg3[%c0_9, %c0_10] : memref<32x128xf32, #tpu.memory_space<vmem>>, vector<32x128xf32>
    %19 = arith.subf %18, %17 : vector<32x128xf32>
    %20 = arith.mulf %16, %19 : vector<32x128xf32>
    %21 = arith.addf %17, %20 : vector<32x128xf32>
    %c0_11 = arith.constant 0 : index
    %c0_12 = arith.constant 0 : index
    %22 = vector.load %arg6[%c0_11, %c0_12] : memref<32x128xf32, #tpu.memory_space<vmem>>, vector<32x128xf32>
    tpu.vector_store %arg6[%c0_11, %c0_12], %21 {strides = array<i32>} : memref<32x128xf32, #tpu.memory_space<vmem>>, vector<32x128xf32>,
    return
  }
  func.func @transform_0(%arg0: i32, %arg1: i32) -> (i32, i32) {
    %c0_i32 = arith.constant 0 : i32
    return %arg0, %arg1 : i32, i32
  }
  func.func @transform_1(%arg0: i32, %arg1: i32) -> (i32, i32) {
    %c0_i32 = arith.constant 0 : i32
    return %arg0, %arg1 : i32, i32
  }
  func.func @transform_2(%arg0: i32, %arg1: i32) -> (i32, i32) {
    %c0_i32 = arith.constant 0 : i32
    return %arg0, %arg1 : i32, i32
  }
  func.func @transform_3(%arg0: i32, %arg1: i32) -> (i32, i32) {
    %c0_i32 = arith.constant 0 : i32
    %c0_i32_0 = arith.constant 0 : i32
    %c0_i32_1 = arith.constant 0 : i32
    return %c0_i32, %c0_i32_0 : i32, i32
  }
  func.func @transform_4(%arg0: i32, %arg1: i32) -> (i32, i32) {
    %c0_i32 = arith.constant 0 : i32
    return %arg0, %arg1 : i32, i32
  }
}

</mosaic_0001>

<bundles_post_ra>
// kernel: tpu_custom_call.1
= control target key start
LH: loop header
LB: loop body
LE: loop exit
PB: predicated region body
PF: predicated region fallthrough
CT: control target
= control target key end

     0   :  { %10 = vsyncpa [#allocation4], 0  ;;  %s322_s0 = inlined_call_operand.hbm [shape: f32[32,128], index: 0, kind: input, shape index: {}]   ;;  %s323_s1 = inlined_call_operand.hbm [shape: f32[32,128], index: 1, kind: input, shape index: {}]   ;;  %s324_s2 = inlined_call_operand.hbm [shape: f32[32,128], index: 2, kind: input, shape index: {}]   ;;  %s325_s3 = inlined_call_operand.<no memory space> [shape: f32[1,1], index: 3, kind: input, shape index: {}]   ;;  %s326_s4 = inlined_call_operand.hbm [shape: f32[32,128], index: 4, kind: output, shape index: {}]  }
   0x1   :  { %11 = vsyncpa [#allocation7], 0 }
   0x2   :  { %12 = vsyncpa [#allocation5], 0  ;;  %s264_s15 = smov [#allocation6]   ;;  %s265_s17 = smov [#allocation3]  }
   0x3   :  { %s30_s16 = sshll.u32 %s264_s15, 4  ;;  %s18_s18 = sshll.u32 %s265_s17, 4  ;;  %s31_s16 = int_to_ptr.vmem [resolvable:$true] %s30_s16  ;;  %s19_s18 = int_to_ptr.vmem [resolvable:$true] %s18_s18 }
   0x4   :  { %s186_s19 = scalar_lea.vmem %s31_s16, 512  ;;  %p191_p1 = scmp.lt.s32.totalorder %s31_s16, %s31_s16 }
   0x5   :  { %p187_p0 = scmp.ne.s32.totalorder %s31_s16, %s186_s19  ;;  %p192_p2 = scmp.lt.s32.totalorder %s186_s19, %s186_s19 }
   0x7   :  { %p193_p3 = por %p192_p2, %p191_p1 }
   0x9   :  { %p194_p4 = pnand %p193_p3, %p187_p0 }
   0xb   :  { %197 = shalt.err (!%p194_p4)
}
   0xc   :  { %s266_s20 = smov 128   ;;  %s267_s21 = smov 8  }
   0xd   :  { %36 = dma.hbm_to_vmem [thread:$0]  %s323_s1, 512, %s31_s16, [#allocation7], %s266_s20, %s266_s20, %s267_s21  }
   0xe   :  { %s206_s24 = scalar_lea.vmem %s19_s18, 512  ;;  %p211_p6 = scmp.lt.s32.totalorder %s19_s18, %s19_s18 }
   0xf   :  { %p207_p5 = scmp.ne.s32.totalorder %s19_s18, %s206_s24  ;;  %p212_p7 = scmp.lt.s32.totalorder %s206_s24, %s206_s24 }
  0x11   :  { %p213_p8 = por %p212_p7, %p211_p6 }
  0x13   :  { %p214_p9 = pnand %p213_p8, %p207_p5 }
  0x15   :  { %217 = shalt.err (!%p214_p9)
}
  0x16   :  { %24 = dma.hbm_to_vmem [thread:$0]  %s322_s0, 512, %s19_s18, [#allocation4], %s266_s20, %s266_s20, %s267_s21  }
  0x17   :  { %s268_s27 = smov [#allocation8]  }
  0x18   :  { %s42_s28 = sshll.u32 %s268_s27, 4  ;;  %s43_s28 = int_to_ptr.vmem [resolvable:$true] %s42_s28 }
  0x19   :  { %s226_s29 = scalar_lea.vmem %s43_s28, 512  ;;  %p231_p11 = scmp.lt.s32.totalorder %s43_s28, %s43_s28 }
  0x1a   :  { %p227_p10 = scmp.ne.s32.totalorder %s43_s28, %s226_s29  ;;  %p232_p12 = scmp.lt.s32.totalorder %s226_s29, %s226_s29 }
  0x1c   :  { %p233_p13 = por %p232_p12, %p231_p11 }
  0x1e   :  { %p234_p0 = pnand %p233_p13, %p227_p10 }
  0x20   :  { %237 = shalt.err (!%p234_p0)
}
  0x21   :  { %48 = dma.hbm_to_vmem [thread:$0]  %s324_s2, 512, %s43_s28, [#allocation7], %s266_s20, %s266_s20, %s267_s21  }
  0x22   :  { %258 = dma.done.wait [#allocation4], 512  }
  0x23   :  { %259 = vsyncadd [#allocation4], 4294966784 }
  0x24   :  { %260 = dma.done.wait [#allocation7], 1024  }
  0x25   :  { %261 = vsyncadd [#allocation7], 4294966272  ;;  %v60_v0 = vld [vmem:[#allocation8] sm:$0xff]  ;;  %v61_v2 = vld [vmem:[#allocation8 + $0x8] sm:$0xff]  ;;  %v105_v32 = vstv %s325_s3  ;;  %s269_s3 = smov [#allocation9]  }
  0x26   :  { %v152_v1 = vmul.f32 -1.442695, %v60_v0  ;;  %v153_v3 = vmul.f32 -1.442695, %v61_v2  ;;  %v62_v4 = vld [vmem:[#allocation8 + $0x10] sm:$0xff]  ;;  %v63_v6 = vld [vmem:[#allocation8 + $0x18] sm:$0xff] }
  0x27   :  { %v154_v5 = vmul.f32 -1.442695, %v62_v4  ;;  %v155_v7 = vmul.f32 -1.442695, %v63_v6  ;;  %v110_v24 = vld [vmem:[#allocation3] sm:$0xff]  ;;  %v111_v29 = vld [vmem:[#allocation3 + $0x8] sm:$0xff] }
  0x28   :  { %162 = vpow2.f32 %v152_v1  ;;  %v114_v25 = vld [vmem:[#allocation6] sm:$0xff]  ;;  %v115_v30 = vld [vmem:[#allocation6 + $0x8] sm:$0xff]  ;;  %v112_v34 = vld [vmem:[#allocation3 + $0x10] sm:$0xff]  ;;  %s139_s5 = sshll.u32 %s269_s3, 4  ;;  %s140_s5 = int_to_ptr.vmem [resolvable:$true] %s139_s5 }
  0x29   :  { %164 = vpow2.f32 %v153_v3  ;;  %v116_v35 = vld [vmem:[#allocation6 + $0x10] sm:$0xff]  ;;  %v118_v38 = vsub.f32 %v114_v25, %v110_v24  ;;  %v113_v40 = vld [vmem:[#allocation3 + $0x18] sm:$0xff]  ;;  %v119_v43 = vsub.f32 %v115_v30, %v111_v29  ;;  %s238_s6 = scalar_lea.vmem %s140_s5, 512  ;;  %p243_p2 = scmp.lt.s32.totalorder %s140_s5, %s140_s5 }
  0x2a   :  { %166 = vpow2.f32 %v154_v5  ;;  %v117_v41 = vld [vmem:[#allocation6 + $0x18] sm:$0xff]  ;;  %v120_v47 = vsub.f32 %v116_v35, %v112_v34  ;;  %p239_p1 = scmp.ne.s32.totalorder %s140_s5, %s238_s6  ;;  %p244_p3 = scmp.lt.s32.totalorder %s238_s6, %s238_s6 }
  0x2b   :  { %168 = vpow2.f32 %v155_v7  ;;  %v121_v50 = vsub.f32 %v117_v41, %v113_v40 }
  0x2c   :  { %p245_p4 = por %p244_p3, %p243_p2 }
  0x2e   :  { %p246_p5 = pnand %p245_p4, %p239_p1 }
  0x35   :  { %v163_v8 = vpop.eup %162 }
  0x36   :  { %v165_v9 = vpop.eup %164  ;;  %v76_v10 = vadd.f32 1.0, %v163_v8 }
  0x37   :  { %v167_v11 = vpop.eup %166  ;;  %v77_v12 = vadd.f32 1.0, %v165_v9 }
  0x38   :  { %v169_v13 = vpop.eup %168  ;;  %170 = vrcp.f32 %v76_v10  ;;  %v78_v14 = vadd.f32 1.0, %v167_v11 }
  0x39   :  { %172 = vrcp.f32 %v77_v12  ;;  %v79_v15 = vadd.f32 1.0, %v169_v13 }
  0x3a   :  { %174 = vrcp.f32 %v78_v14 }
  0x3b   :  { %176 = vrcp.f32 %v79_v15 }
  0x45   :  { %v171_v16 = vpop.eup %170 }
  0x46   :  { %v173_v17 = vpop.eup %172  ;;  %v88_v18 = vmul.f32 3.0, %v171_v16 }
  0x47   :  { %v175_v19 = vpop.eup %174  ;;  %v89_v20 = vmul.f32 3.0, %v173_v17 }
  0x48   :  { %v177_v21 = vpop.eup %176  ;;  %v92_v22 = vadd.f32 -1.5, %v88_v18  ;;  %v90_v23 = vmul.f32 3.0, %v175_v19 }
  0x49   :  { %v93_v26 = vadd.f32 -1.5, %v89_v20  ;;  %v91_v27 = vmul.f32 3.0, %v177_v21 }
  0x4a   :  { %v96_v28 = vmax.f32 %v92_v22, 0.0  ;;  %v94_v31 = vadd.f32 -1.5, %v90_v23 }
  0x4b   :  { %v97_v33 = vmax.f32 %v93_v26, 0.0  ;;  %v95_v36 = vadd.f32 -1.5, %v91_v27 }
  0x4c   :  { %v100_v37 = vmin.f32 %v96_v28, 1.0  ;;  %v98_v39 = vmax.f32 %v94_v31, 0.0 }
  0x4d   :  { %v101_v42 = vmin.f32 %v97_v33, 1.0  ;;  %v99_v44 = vmax.f32 %v95_v36, 0.0 }
  0x4e   :  { %v106_v45 = vmul.f32 %v105_v32, %v100_v37  ;;  %v102_v46 = vmin.f32 %v98_v39, 1.0 }
  0x4f   :  { %v107_v48 = vmul.f32 %v105_v32, %v101_v42  ;;  %v103_v49 = vmin.f32 %v99_v44, 1.0 }
  0x50   :  { %v122_v51 = vmul.f32 %v118_v38, %v106_v45  ;;  %v108_v52 = vmul.f32 %v105_v32, %v102_v46 }
  0x51   :  { %v123_v53 = vmul.f32 %v119_v43, %v107_v48  ;;  %v109_v54 = vmul.f32 %v105_v32, %v103_v49 }
  0x52   :  { %v126_v55 = vadd.f32 %v122_v51, %v110_v24  ;;  %v124_v56 = vmul.f32 %v120_v47, %v108_v52 }
  0x53   :  { %v127_v57 = vadd.f32 %v123_v53, %v111_v29  ;;  %v125_v58 = vmul.f32 %v121_v50, %v109_v54 }
  0x54   :  { %130 = vst [vmem:[#allocation9] sm:$0xff] %v126_v55  ;;  %v128_v59 = vadd.f32 %v124_v56, %v112_v34 }
  0x55   :  { %131 = vst [vmem:[#allocation9 + $0x8] sm:$0xff] %v127_v57  ;;  %v129_v60 = vadd.f32 %v125_v58, %v113_v40 }
  0x56   :  { %132 = vst [vmem:[#allocation9 + $0x10] sm:$0xff] %v128_v59 }
  0x57   :  { %133 = vst [vmem:[#allocation9 + $0x18] sm:$0xff] %v129_v60 }
  0x58   :  { %249 = shalt.err (!%p246_p5)
}
  0x59   :  { %145 = dma.vmem_to_hbm [thread:$0]  %s140_s5, 512, %s326_s4, [#allocation5], %s266_s20, %s266_s20, %s267_s21  }
  0x5a   :  { %262 = dma.done.wait [#allocation5], 512  }
  0x5b   :  { %263 = vsyncadd [#allocation5], 4294966784 }
  0x5c   :  { %149 = vsyncpa [#allocation4], 1 }
  0x5d   :  { %150 = vsyncpa [#allocation7], 1 }
  0x5e   :  { %151 = vsyncpa [#allocation5], 1 }

</bundles_post_ra>
